<compile_context>
chip_gen: v6e
topology: v6e:2x2x1
jax: 0.10.0
libtpu: 0.0.40
codegen_flags: <defaults>
</compile_context>

<pallas_src>
import jax
import jax.numpy as jnp
from jax.experimental import pallas as pl
from jax.experimental.pallas import tpu as pltpu

LN_EPS = 1e-5  # PyTorch nn.LayerNorm default


def _round_up(x, m):
    return (x + m - 1) // m * m


def _layernorm_f32(x, gamma, beta):
    """LayerNorm over the last axis. Two-pass centered variance (PyTorch
    semantics, no catastrophic cancellation); rsqrt goes to the EUP slot."""
    mean = jnp.mean(x, axis=-1, keepdims=True)
    xc = x - mean
    var = jnp.mean(xc * xc, axis=-1, keepdims=True)
    inv = jax.lax.rsqrt(var + LN_EPS)
    return xc * inv * gamma + beta


def critic_kernel(sa_ref, w13_ref, b13_ref, ln1_ref, w2_ref, ln2_ref,
                  wq_ref, bq_ref, q_ref):
    f32 = jnp.float32
    mxu_dtype = w13_ref.dtype          # bf16 or f32 -- set by packed params
    fc1 = ln1_ref.shape[1]

    sa = sa_ref[...]                   # (TB, s_dim + a_dim), already mxu_dtype

    # Fused fc1|fc3: single MXU pass over the block-diagonal weight,
    # f32 accumulation, fused bias [b1|b3].
    h = jnp.dot(sa, w13_ref[...], preferred_element_type=f32) + b13_ref[...]
    h1 = h[:, :fc1]                    # fc1(s) pre-LN
    ha = h[:, fc1:]                    # fc3(a)

    # x_s = relu(ln1(fc1(s)))
    ln1p = ln1_ref[...]                # (2, fc1): [gamma1; beta1]
    h1 = _layernorm_f32(h1, ln1p[0:1, :], ln1p[1:2, :])
    h1 = jnp.maximum(h1, 0.0)

    # x_s = ln2(fc2(x_s))
    ln2p = ln2_ref[...]                # (3, fc2): [b2; gamma2; beta2]
    h2 = jnp.dot(h1.astype(mxu_dtype), w2_ref[...],
                 preferred_element_type=f32) + ln2p[0:1, :]
    h2 = _layernorm_f32(h2, ln2p[1:2, :], ln2p[2:3, :])

    # x = relu(x_s + x_a)
    x = jnp.maximum(h2 + ha, 0.0)

    # q = x @ wq + bq with N=1: VPU multiply + XLU lane reduce (no MXU pass),
    # stored as a (TB, 1) block (masked store; avoids sublane->lane relayout).
    q = jnp.sum(x * wq_ref[...], axis=-1, keepdims=True) + bq_ref[0]
    q_ref[...] = q.astype(q_ref.dtype)


def critic_forward(s, a, p, *, block_b=2048):
    """Fused CriticNet forward. Returns q of shape (B, 1), float32.
    `p` is a packed-params dict from pack_params()."""
    B, s_dim = s.shape
    a_dim = a.shape[1]
    fc1 = p["ln1"].shape[1]
    fc2 = p["ln2"].shape[1]
    mxu_dtype = p["w13"].dtype
    sa_dim = s_dim + a_dim

    # Sublane alignment follows the MXU operand dtype (8 rows f32, 16 bf16).
    sublane = 8 * (4 // jnp.dtype(mxu_dtype).itemsize)

    # Batch tile. Guarantee >= 2 grid blocks whenever the batch allows it so
    # the "parallel" axis can shard across both v7x TensorCores; otherwise
    # use big 128-row-aligned tiles to amortize per-step grid overhead.
    if B > block_b:
        TB = _round_up(block_b, 128)
    elif B > sublane:
        TB = _round_up((B + 1) // 2, sublane)     # ~2 blocks
    else:
        TB = _round_up(max(B, 1), sublane)        # tiny batch: single block
    B_pad = _round_up(B, TB)

    # Single fused [s|a] input stream (one DMA stream, one MXU operand).
    sa = jnp.concatenate([s, a], axis=-1).astype(mxu_dtype)
    if B_pad != B:
        sa = jnp.pad(sa, ((0, B_pad - B), (0, 0)))

    grid = (B_pad // TB,)

    def resident(shape):
        # Full-extent block, constant index_map -> stays resident in VMEM.
        return pl.BlockSpec(tuple(shape), lambda i: (0, 0))

    in_specs = [
        pl.BlockSpec((TB, sa_dim), lambda i: (i, 0)),          # [s|a] batch tile
        resident(p["w13"].shape),                              # block-diag fc1|fc3
        resident(p["b13"].shape),                              # [b1|b3]
        resident(p["ln1"].shape),                              # [g1; be1]
        resident(p["w2"].shape),
        resident(p["ln2"].shape),                              # [b2; g2; be2]
        resident(p["wq"].shape),                               # (1, fc2) f32 head
        pl.BlockSpec(memory_space=pltpu.MemorySpace.SMEM),     # bq scalar
    ]
    out_specs = pl.BlockSpec((TB, 1), lambda i: (i, 0))

    # Advisory cost estimate for XLA scheduling around the custom call.
    flops = 2 * B_pad * (sa_dim * (fc1 + fc2) + fc1 * fc2 + fc2)
    param_bytes = sum(int(v.size) * v.dtype.itemsize for v in p.values())
    bytes_accessed = int(sa.size) * sa.dtype.itemsize + B_pad * 4 + param_bytes
    cost = pl.CostEstimate(flops=flops, transcendentals=2 * B_pad,
                           bytes_accessed=bytes_accessed)

    q = pl.pallas_call(
        critic_kernel,
        out_shape=jax.ShapeDtypeStruct((B_pad, 1), jnp.float32),
        grid=grid,
        in_specs=in_specs,
        out_specs=out_specs,
        compiler_params=pltpu.CompilerParams(
            dimension_semantics=("parallel",),   # megacore shard on v7x
            vmem_limit_bytes=48 * 1024 * 1024,   # explicit; < v7x 64 MiB VMEM
        ),
        cost_estimate=cost,
    )(sa, p["w13"], p["b13"], p["ln1"], p["w2"], p["ln2"], p["wq"], p["bq"])

    return q[:B]


# ----------------------------------------------------------------------------
# Parameter construction (PyTorch-default Linear init) and kernel packing.
# ----------------------------------------------------------------------------

def init_raw_params(key, s_dim, a_dim, fc1_dim, fc2_dim):
    ks = jax.random.split(key, 4)

    def linear(k, fan_in, fan_out):
        kw, kb = jax.random.split(k)
        bound = 1.0 / jnp.sqrt(float(fan_in))
        w = jax.random.uniform(kw, (fan_in, fan_out), jnp.float32, -bound, bound)
        b = jax.random.uniform(kb, (1, fan_out), jnp.float32, -bound, bound)
        return w, b

    w1, b1 = linear(ks[0], s_dim, fc1_dim)
    w2, b2 = linear(ks[1], fc1_dim, fc2_dim)
    w3, b3 = linear(ks[2], a_dim, fc2_dim)
    wq, bq = linear(ks[3], fc2_dim, 1)
    return {
        "w1": w1, "b1": b1,
        "g1": jnp.ones((1, fc1_dim), jnp.float32),
        "be1": jnp.zeros((1, fc1_dim), jnp.float32),
        "w2": w2, "b2": b2,
        "g2": jnp.ones((1, fc2_dim), jnp.float32),
        "be2": jnp.zeros((1, fc2_dim), jnp.float32),
        "w3": w3, "b3": b3,
        "wq": wq, "bq": bq,          # wq: (fc2, 1), bq: (1, 1)
    }


def pack_params(raw, mxu_dtype=jnp.float32):
    """Pack raw params into the fused kernel layout.
    `mxu_dtype` applies only to the MXU weight operands (w13 / w2); the
    LayerNorm params, biases and the N=1 head stay f32 (LN math must be f32;
    v5e's MXU accepts bf16 even though its VPU/EUP do not)."""
    s_dim, fc1 = raw["w1"].shape
    a_dim, fc2 = raw["w3"].shape

    # Block-diagonal [[w1, 0], [0, w3]]: one MXU pass computes fc1(s) | fc3(a).
    w13 = jnp.zeros((s_dim + a_dim, fc1 + fc2), jnp.float32)
    w13 = w13.at[:s_dim, :fc1].set(raw["w1"])
    w13 = w13.at[s_dim:, fc1:].set(raw["w3"])

    return {
        "w13": w13.astype(mxu_dtype),
        "b13": jnp.concatenate([raw["b1"], raw["b3"]], axis=-1),          # (1, fc1+fc2)
        "ln1": jnp.concatenate([raw["g1"], raw["be1"]], axis=0),          # (2, fc1)
        "ln2": jnp.concatenate([raw["b2"], raw["g2"], raw["be2"]], axis=0),  # (3, fc2)
        "w2": raw["w2"].astype(mxu_dtype),
        "wq": raw["wq"].reshape(1, fc2).astype(jnp.float32),
        "bq": raw["bq"].reshape(1).astype(jnp.float32),
    }


def critic_reference(s, a, raw, compute_dtype=jnp.float32):
    """Pure-JAX reference with matmul operands rounded to the kernel's MXU
    dtype, so the comparison isolates kernel correctness."""
    f32 = jnp.float32

    def mm(x, w):
        return jnp.dot(x.astype(compute_dtype), w.astype(compute_dtype),
                       preferred_element_type=f32)

    def ln(x, g, b):
        m = jnp.mean(x, -1, keepdims=True)
        v = jnp.mean(jnp.square(x - m), -1, keepdims=True)
        return (x - m) * jax.lax.rsqrt(v + LN_EPS) * g + b

    h1 = jnp.maximum(ln(mm(s, raw["w1"]) + raw["b1"], raw["g1"], raw["be1"]), 0.0)
    h2 = ln(mm(h1, raw["w2"]) + raw["b2"], raw["g2"], raw["be2"])
    ha = mm(a, raw["w3"]) + raw["b3"]
    x = jnp.maximum(h2 + ha, 0.0)
    return jnp.dot(x, raw["wq"].astype(f32)) + raw["bq"].reshape(1, 1)


if __name__ == "__main__":
    S_DIM, A_DIM, FC1, FC2 = 16, 4, 64, 32

    key = jax.random.PRNGKey(0)
    k_s, k_a, k_p = jax.random.split(key, 3)
    raw = init_raw_params(k_p, S_DIM, A_DIM, FC1, FC2)
    params_f32 = pack_params(raw, jnp.float32)
    params_bf16 = pack_params(raw, jnp.bfloat16)

    # 1) f32, tiny batch (single grid block) -- strict check.
    B = 8
    s = jax.random.normal(k_s, (B, S_DIM), jnp.float32)
    a = jax.random.normal(k_a, (B, A_DIM), jnp.float32)
    q = jax.block_until_ready(critic_forward(s, a, params_f32))
    q_ref = critic_reference(s, a, raw)
    assert q.shape == (B, 1)
    assert jnp.allclose(q, q_ref, atol=1e-3, rtol=1e-3), (q, q_ref)

    # 2) f32, ragged batch -> padded rows + 2-block parallel grid.
    B = 50
    s = jax.random.normal(k_s, (B, S_DIM), jnp.float32)
    a = jax.random.normal(k_a, (B, A_DIM), jnp.float32)
    q = jax.block_until_ready(critic_forward(s, a, params_f32))
    assert q.shape == (B, 1)
    assert jnp.allclose(q, critic_reference(s, a, raw), atol=1e-3, rtol=1e-3)

    # 3) f32, larger batch -> multi-block pipelined (megacore-parallel) grid.
    B = 256
    s = jax.random.normal(k_s, (B, S_DIM), jnp.float32)
    a = jax.random.normal(k_a, (B, A_DIM), jnp.float32)
    q = jax.block_until_ready(critic_forward(s, a, params_f32))
    assert q.shape == (B, 1)
    assert jnp.allclose(q, critic_reference(s, a, raw), atol=1e-3, rtol=1e-3)

    # 4) bf16 MXU-operand path (all generations incl. v5e): bf16 weights and
    #    activations into the MXU, f32 accumulation, f32 LayerNorm.
    q_bf = jax.block_until_ready(critic_forward(s, a, params_bf16))
    q_bf_ref = critic_reference(s, a, raw, compute_dtype=jnp.bfloat16)
    assert q_bf.shape == (B, 1)
    assert bool(jnp.all(jnp.isfinite(q_bf)))
    assert jnp.allclose(q_bf, q_bf_ref, atol=2e-2, rtol=2e-2)

    print("KERNEL_OK")
</pallas_src>

<mosaic_0001>
module attributes {stable_mosaic.version = 11 : i64} {
  func.func @critic_kernel(%arg0: i32, %arg1: memref<8x20xf32, #tpu.memory_space<vmem>>, %arg2: memref<20x96xf32, #tpu.memory_space<vmem>>, %arg3: memref<1x96xf32, #tpu.memory_space<vmem>>, %arg4: memref<2x64xf32, #tpu.memory_space<vmem>>, %arg5: memref<64x32xf32, #tpu.memory_space<vmem>>, %arg6: memref<3x32xf32, #tpu.memory_space<vmem>>, %arg7: memref<1x32xf32, #tpu.memory_space<vmem>>, %arg8: memref<1xf32, #tpu.memory_space<smem>>, %arg9: memref<8x1xf32, #tpu.memory_space<vmem>>) attributes {dimension_semantics = [#tpu.dimension_semantics<parallel>], iteration_bounds = array<i64: 1>, scalar_prefetch = 0 : i64, scratch_operands = 0 : i64, tpu.core_type = #tpu.core_type<tc>, window_params = [{transform_indices = @transform_0, window_bounds = array<i64: 8, 20>}, {pipeline_mode = #tpu.pipeline_mode<synchronous>, transform_indices = @transform_1, window_bounds = array<i64: 20, 96>}, {pipeline_mode = #tpu.pipeline_mode<synchronous>, transform_indices = @transform_2, window_bounds = array<i64: 1, 96>}, {pipeline_mode = #tpu.pipeline_mode<synchronous>, transform_indices = @transform_3, window_bounds = array<i64: 2, 64>}, {pipeline_mode = #tpu.pipeline_mode<synchronous>, transform_indices = @transform_4, window_bounds = array<i64: 64, 32>}, {pipeline_mode = #tpu.pipeline_mode<synchronous>, transform_indices = @transform_5, window_bounds = array<i64: 3, 32>}, {pipeline_mode = #tpu.pipeline_mode<synchronous>, transform_indices = @transform_6, window_bounds = array<i64: 1, 32>}, {transform_indices = @transform_7, window_bounds = array<i64: 1>}, {transform_indices = @transform_8, window_bounds = array<i64: 8, 1>}]} {
    %c0 = arith.constant 0 : index
    %c0_0 = arith.constant 0 : index
    %0 = vector.load %arg1[%c0, %c0_0] : memref<8x20xf32, #tpu.memory_space<vmem>>, vector<8x20xf32>
    %c0_1 = arith.constant 0 : index
    %c0_2 = arith.constant 0 : index
    %1 = vector.load %arg2[%c0_1, %c0_2] : memref<20x96xf32, #tpu.memory_space<vmem>>, vector<20x96xf32>
    %cst = arith.constant dense<0.000000e+00> : vector<8x96xf32>
    %2 = tpu.matmul %0, %1, %cst {dimension_numbers = #tpu.dot_dimension_numbers<[1], [0], [0], [1], [0, 0, 1, 1], [], []>} : vector<8x20xf32>, vector<20x96xf32>, vector<8x96xf32> -> vector<8x96xf32>
    %c0_3 = arith.constant 0 : index
    %c0_4 = arith.constant 0 : index
    %3 = vector.load %arg3[%c0_3, %c0_4] : memref<1x96xf32, #tpu.memory_space<vmem>>, vector<1x96xf32>
    %4 = vector.broadcast %3 : vector<1x96xf32> to vector<8x96xf32>
    %5 = arith.addf %2, %4 : vector<8x96xf32>
    %6 = vector.extract_strided_slice %5 {offsets = [0, 0], sizes = [8, 64], strides = [1, 1]} : vector<8x96xf32> to vector<8x64xf32>
    %7 = vector.extract_strided_slice %5 {offsets = [0, 64], sizes = [8, 32], strides = [1, 1]} : vector<8x96xf32> to vector<8x32xf32>
    %c0_5 = arith.constant 0 : index
    %c0_6 = arith.constant 0 : index
    %8 = vector.load %arg4[%c0_5, %c0_6] : memref<2x64xf32, #tpu.memory_space<vmem>>, vector<2x64xf32>
    %9 = vector.extract_strided_slice %8 {offsets = [0, 0], sizes = [1, 64], strides = [1, 1]} : vector<2x64xf32> to vector<1x64xf32>
    %10 = vector.extract_strided_slice %8 {offsets = [1, 0], sizes = [1, 64], strides = [1, 1]} : vector<2x64xf32> to vector<1x64xf32>
    %cst_7 = arith.constant dense<0.000000e+00> : vector<8xf32>
    %11 = vector.multi_reduction <add>, %6, %cst_7 [1] : vector<8x64xf32> to vector<8xf32>
    %12 = vector.shape_cast %11 : vector<8xf32> to vector<8x1xf32>
    %cst_8 = arith.constant 6.400000e+01 : f32
    %13 = vector.broadcast %cst_8 : f32 to vector<8x1xf32>
    %14 = arith.divf %12, %13 : vector<8x1xf32>
    %15 = vector.broadcast %14 : vector<8x1xf32> to vector<8x64xf32>
    %16 = arith.subf %6, %15 : vector<8x64xf32>
    %17 = arith.mulf %16, %16 : vector<8x64xf32>
    %cst_9 = arith.constant dense<0.000000e+00> : vector<8xf32>
    %18 = vector.multi_reduction <add>, %17, %cst_9 [1] : vector<8x64xf32> to vector<8xf32>
    %19 = vector.shape_cast %18 : vector<8xf32> to vector<8x1xf32>
    %cst_10 = arith.constant 6.400000e+01 : f32
    %20 = vector.broadcast %cst_10 : f32 to vector<8x1xf32>
    %21 = arith.divf %19, %20 : vector<8x1xf32>
    %cst_11 = arith.constant 9.99999974E-6 : f32
    %22 = vector.broadcast %cst_11 : f32 to vector<8x1xf32>
    %23 = arith.addf %21, %22 : vector<8x1xf32>
    %24 = math.rsqrt %23 : vector<8x1xf32>
    %25 = vector.broadcast %24 : vector<8x1xf32> to vector<8x64xf32>
    %26 = arith.mulf %16, %25 : vector<8x64xf32>
    %27 = vector.broadcast %9 : vector<1x64xf32> to vector<8x64xf32>
    %28 = arith.mulf %26, %27 : vector<8x64xf32>
    %29 = vector.broadcast %10 : vector<1x64xf32> to vector<8x64xf32>
    %30 = arith.addf %28, %29 : vector<8x64xf32>
    %cst_12 = arith.constant 0.000000e+00 : f32
    %31 = vector.broadcast %cst_12 : f32 to vector<8x64xf32>
    %32 = arith.maximumf %30, %31 : vector<8x64xf32>
    %c0_13 = arith.constant 0 : index
    %c0_14 = arith.constant 0 : index
    %33 = vector.load %arg6[%c0_13, %c0_14] : memref<3x32xf32, #tpu.memory_space<vmem>>, vector<3x32xf32>
    %c0_15 = arith.constant 0 : index
    %c0_16 = arith.constant 0 : index
    %34 = vector.load %arg5[%c0_15, %c0_16] : memref<64x32xf32, #tpu.memory_space<vmem>>, vector<64x32xf32>
    %cst_17 = arith.constant dense<0.000000e+00> : vector<8x32xf32>
    %35 = tpu.matmul %32, %34, %cst_17 {dimension_numbers = #tpu.dot_dimension_numbers<[1], [0], [0], [1], [0, 0, 1, 1], [], []>} : vector<8x64xf32>, vector<64x32xf32>, vector<8x32xf32> -> vector<8x32xf32>
    %36 = vector.extract_strided_slice %33 {offsets = [0, 0], sizes = [1, 32], strides = [1, 1]} : vector<3x32xf32> to vector<1x32xf32>
    %37 = vector.broadcast %36 : vector<1x32xf32> to vector<8x32xf32>
    %38 = arith.addf %35, %37 : vector<8x32xf32>
    %39 = vector.extract_strided_slice %33 {offsets = [1, 0], sizes = [1, 32], strides = [1, 1]} : vector<3x32xf32> to vector<1x32xf32>
    %40 = vector.extract_strided_slice %33 {offsets = [2, 0], sizes = [1, 32], strides = [1, 1]} : vector<3x32xf32> to vector<1x32xf32>
    %cst_18 = arith.constant dense<0.000000e+00> : vector<8xf32>
    %41 = vector.multi_reduction <add>, %38, %cst_18 [1] : vector<8x32xf32> to vector<8xf32>
    %42 = vector.shape_cast %41 : vector<8xf32> to vector<8x1xf32>
    %cst_19 = arith.constant 3.200000e+01 : f32
    %43 = vector.broadcast %cst_19 : f32 to vector<8x1xf32>
    %44 = arith.divf %42, %43 : vector<8x1xf32>
    %45 = vector.broadcast %44 : vector<8x1xf32> to vector<8x32xf32>
    %46 = arith.subf %38, %45 : vector<8x32xf32>
    %47 = arith.mulf %46, %46 : vector<8x32xf32>
    %cst_20 = arith.constant dense<0.000000e+00> : vector<8xf32>
    %48 = vector.multi_reduction <add>, %47, %cst_20 [1] : vector<8x32xf32> to vector<8xf32>
    %49 = vector.shape_cast %48 : vector<8xf32> to vector<8x1xf32>
    %cst_21 = arith.constant 3.200000e+01 : f32
    %50 = vector.broadcast %cst_21 : f32 to vector<8x1xf32>
    %51 = arith.divf %49, %50 : vector<8x1xf32>
    %cst_22 = arith.constant 9.99999974E-6 : f32
    %52 = vector.broadcast %cst_22 : f32 to vector<8x1xf32>
    %53 = arith.addf %51, %52 : vector<8x1xf32>
    %54 = math.rsqrt %53 : vector<8x1xf32>
    %55 = vector.broadcast %54 : vector<8x1xf32> to vector<8x32xf32>
    %56 = arith.mulf %46, %55 : vector<8x32xf32>
    %57 = vector.broadcast %39 : vector<1x32xf32> to vector<8x32xf32>
    %58 = arith.mulf %56, %57 : vector<8x32xf32>
    %59 = vector.broadcast %40 : vector<1x32xf32> to vector<8x32xf32>
    %60 = arith.addf %58, %59 : vector<8x32xf32>
    %61 = arith.addf %60, %7 : vector<8x32xf32>
    %cst_23 = arith.constant 0.000000e+00 : f32
    %62 = vector.broadcast %cst_23 : f32 to vector<8x32xf32>
    %63 = arith.maximumf %61, %62 : vector<8x32xf32>
    %c0_24 = arith.constant 0 : index
    %c0_25 = arith.constant 0 : index
    %64 = vector.load %arg7[%c0_24, %c0_25] : memref<1x32xf32, #tpu.memory_space<vmem>>, vector<1x32xf32>
    %65 = vector.broadcast %64 : vector<1x32xf32> to vector<8x32xf32>
    %66 = arith.mulf %63, %65 : vector<8x32xf32>
    %cst_26 = arith.constant dense<0.000000e+00> : vector<8xf32>
    %67 = vector.multi_reduction <add>, %66, %cst_26 [1] : vector<8x32xf32> to vector<8xf32>
    %68 = vector.shape_cast %67 : vector<8xf32> to vector<8x1xf32>
    %c0_27 = arith.constant 0 : index
    %69 = memref.load %arg8[%c0_27] : memref<1xf32, #tpu.memory_space<smem>>
    %70 = vector.broadcast %69 : f32 to vector<8x1xf32>
    %71 = arith.addf %68, %70 : vector<8x1xf32>
    %c0_28 = arith.constant 0 : index
    %c0_29 = arith.constant 0 : index
    %72 = vector.load %arg9[%c0_28, %c0_29] : memref<8x1xf32, #tpu.memory_space<vmem>>, vector<8x1xf32>
    tpu.vector_store %arg9[%c0_28, %c0_29], %71 {strides = array<i32>} : memref<8x1xf32, #tpu.memory_space<vmem>>, vector<8x1xf32>,
    return
  }
  func.func @transform_0(%arg0: i32) -> (i32, i32) {
    %c0_i32 = arith.constant 0 : i32
    %c0_i32_0 = arith.constant 0 : i32
    return %arg0, %c0_i32 : i32, i32
  }
  func.func @transform_1(%arg0: i32) -> (i32, i32) {
    %c0_i32 = arith.constant 0 : i32
    %c0_i32_0 = arith.constant 0 : i32
    %c0_i32_1 = arith.constant 0 : i32
    return %c0_i32, %c0_i32_0 : i32, i32
  }
  func.func @transform_2(%arg0: i32) -> (i32, i32) {
    %c0_i32 = arith.constant 0 : i32
    %c0_i32_0 = arith.constant 0 : i32
    %c0_i32_1 = arith.constant 0 : i32
    return %c0_i32, %c0_i32_0 : i32, i32
  }
  func.func @transform_3(%arg0: i32) -> (i32, i32) {
    %c0_i32 = arith.constant 0 : i32
    %c0_i32_0 = arith.constant 0 : i32
    %c0_i32_1 = arith.constant 0 : i32
    return %c0_i32, %c0_i32_0 : i32, i32
  }
  func.func @transform_4(%arg0: i32) -> (i32, i32) {
    %c0_i32 = arith.constant 0 : i32
    %c0_i32_0 = arith.constant 0 : i32
    %c0_i32_1 = arith.constant 0 : i32
    return %c0_i32, %c0_i32_0 : i32, i32
  }
  func.func @transform_5(%arg0: i32) -> (i32, i32) {
    %c0_i32 = arith.constant 0 : i32
    %c0_i32_0 = arith.constant 0 : i32
    %c0_i32_1 = arith.constant 0 : i32
    return %c0_i32, %c0_i32_0 : i32, i32
  }
  func.func @transform_6(%arg0: i32) -> (i32, i32) {
    %c0_i32 = arith.constant 0 : i32
    %c0_i32_0 = arith.constant 0 : i32
    %c0_i32_1 = arith.constant 0 : i32
    return %c0_i32, %c0_i32_0 : i32, i32
  }
  func.func @transform_7(%arg0: i32) -> i32 {
    %c0_i32 = arith.constant 0 : i32
    %c0_i32_0 = arith.constant 0 : i32
    return %c0_i32 : i32
  }
  func.func @transform_8(%arg0: i32) -> (i32, i32) {
    %c0_i32 = arith.constant 0 : i32
    %c0_i32_0 = arith.constant 0 : i32
    return %arg0, %c0_i32 : i32, i32
  }
}

</mosaic_0001>

<bundles_post_ra>
// kernel: tpu_custom_call.1
= control target key start
LH: loop header
LB: loop body
LE: loop exit
PB: predicated region body
PF: predicated region fallthrough
CT: control target
= control target key end

     0   :  { %vm45_vm0 = vcmask 1043456   ;;  %v336_v0 = vmov 0.0   ;;  %vm337_vm1 = vmmov 0   ;;  %vm41_vm2 = vcmask 162816   ;;  %s338_s22 = smov 64   ;;  %s444_s1 = inlined_call_operand.vmem [shape: f32[20,96], index: 1, kind: input, shape index: {}]   ;;  %s445_s0 = inlined_call_operand.vmem [shape: f32[8,20], index: 0, kind: input, shape index: {}]   ;;  %s446_s2 = inlined_call_operand.vmem [shape: f32[1,96], index: 2, kind: input, shape index: {}]   ;;  %s447_s4 = inlined_call_operand.vmem [shape: f32[64,32], index: 4, kind: input, shape index: {}]   ;;  %s448_s3 = inlined_call_operand.vmem [shape: f32[2,64], index: 3, kind: input, shape index: {}]   ;;  %s449_s5 = inlined_call_operand.vmem [shape: f32[3,32], index: 5, kind: input, shape index: {}]   ;;  %s450_s6 = inlined_call_operand.vmem [shape: f32[1,32], index: 6, kind: input, shape index: {}]   ;;  %s451_s7 = inlined_call_operand.<no memory space> [shape: f32[1], index: 7, kind: input, shape index: {}]   ;;  %s452_s8 = inlined_call_operand.vmem [shape: f32[8,1], index: 8, kind: output, shape index: {}]  }
   0x1   :  { %301 = vmatprep.subr.mxu0 %v336_v0  ;;  %v33_v1 = vld [vmem:[%s444_s1 + $0x10] sm:$0xf]  ;;  %v32_v2 = vld [vmem:[%s444_s1 + $0x8] sm:$0xff]  ;;  %307 = vmatprep.mubr.msk.f32.mxu0 %vm337_vm1, %v336_v0  ;;  %v31_v3 = vld [vmem:[%s444_s1] sm:$0xff]  ;;  %vm120_vm3 = vcmask 523264   ;;  %v135_v26 = vlaneseq  ;;  %vm232_vm4 = vcmask 261120  }
   0x2   :  { %302 = vmatpush3.msk.msra.mxu0 %vm45_vm0, %v33_v1  ;;  %310 = vmatprep.subr.mxu1 %v336_v0  ;;  %v30_v4 = vld [vmem:[%s445_s0] sm:$0xff]  ;;  %v154_v15 = vld [vmem:[%s447_s4 + $0x38] sm:$0xff]  ;;  %v153_v16 = vld [vmem:[%s447_s4 + $0x30] sm:$0xff]  ;;  %v275_v1 = vstv %s451_s7  ;;  %vm277_vm5 = vcmask 7168  }
   0x3   :  { %303 = vmatprep.subr.mxu0 %v336_v0  ;;  %326 = vmatprep.mubr.msk.f32.mxu1 %vm337_vm1, %v336_v0  ;;  %v283_v5 = vld [vmem:[%s446_s2] ss:$0 sm:$0xff]  ;;  %v152_v17 = vld [vmem:[%s447_s4 + $0x28] sm:$0xff]  ;;  %v150_v19 = vld [vmem:[%s447_s4 + $0x18] sm:$0xff]  ;;  %v136_v27 = vshrl.u32 %v135_v26, 7 }
   0x4   :  { %304 = vmatpush3.msra.mxu0 %v32_v2  ;;  %311 = vmatpush3.msra.mxu1 %v154_v15  ;;  %v151_v18 = vld [vmem:[%s447_s4 + $0x20] sm:$0xff]  ;;  %v149_v20 = vld [vmem:[%s447_s4 + $0x10] sm:$0xff]  ;;  %v148_v21 = vld [vmem:[%s447_s4 + $0x8] sm:$0xff] }
   0x5   :  { %305 = vmatprep.subr.mxu0 %v336_v0  ;;  %312 = vmatprep.subr.mxu1 %v336_v0  ;;  %v147_v22 = vld [vmem:[%s447_s4] sm:$0xff]  ;;  %v137_v28 = vsub.s32 0, %v136_v27  ;;  %v142_v30 = vsub.s32 1, %v136_v27  ;;  %v254_v52 = vsub.s32 2, %v136_v27 }
   0x6   :  { %306 = vmatpush3.msra.mxu0 %v31_v3  ;;  %313 = vmatpush3.msra.mxu1 %v153_v16  ;;  %v119_v29 = vld [vmem:[%s448_s3] sm:$0x3] }
   0x7   :  { %308 = vmatmul.mubr.msk.f32.vlgmr.msra.gmra.mxu0 %vm41_vm2, %v30_v4  ;;  %314 = vmatprep.subr.mxu1 %v336_v0  ;;  %v138_v31 = vrot.slane %v119_v29, %v137_v28  ;;  %v143_v34 = vrot.slane %v119_v29, %v142_v30  ;;  %v146_v38 = vld [vmem:[%s449_s5] sm:$0x7] }
   0x8   :  { %315 = vmatpush3.msra.mxu1 %v152_v17  ;;  %v158_v39 = vrot.slane %v146_v38, %v137_v28  ;;  %v250_v53 = vrot.slane %v146_v38, %v142_v30  ;;  %v255_v55 = vrot.slane %v146_v38, %v254_v52  ;;  %v287_v61 = vld [vmem:[%s450_s6] ss:$0 sm:$0xff] }
   0x9   :  { %316 = vmatprep.subr.mxu1 %v336_v0 }
   0xa   :  { %317 = vmatpush3.msra.mxu1 %v151_v18 }
   0xb   :  { %318 = vmatprep.subr.mxu1 %v336_v0 }
   0xc   :  { %319 = vmatpush3.msra.mxu1 %v150_v19 }
   0xd   :  { %320 = vmatprep.subr.mxu1 %v336_v0 }
   0xe   :  { %321 = vmatpush3.msra.mxu1 %v149_v20 }
   0xf   :  { %322 = vmatprep.subr.mxu1 %v336_v0 }
  0x10   :  { %323 = vmatpush3.msra.mxu1 %v148_v21 }
  0x11   :  { %324 = vmatprep.subr.mxu1 %v336_v0 }
  0x12   :  { %325 = vmatpush3.msra.mxu1 %v147_v22 }
  0xc7   :  { %v115_v6 = vpop.f32.mrf.mxu0 }
  0xc8   :  { %v116_v7 = vadd.f32 %v283_v5, %v115_v6 }
  0xc9   :  { %v309_v8 = vpop.f32.mrf.mxu0 }
  0xca   :  { %v121_v9 = vsel %vm120_vm3, %v116_v7, 0.0 }
  0xcb   :  { %122 = vadd.xlane.f32.xlu0 %v121_v9 }
 0x154   :  { %v123_v10 = vpop.xlane.xlu0 %122 }
 0x155   :  { %v125_v11 = vmul.f32 0.015625, %v123_v10 }
 0x157   :  { %v126_v12 = vsub.f32 %v116_v7, %v125_v11 }
 0x159   :  { %v127_v13 = vmul.f32 %v126_v12, %v126_v12 }
 0x15b   :  { %v128_v14 = vsel %vm120_vm3, %v127_v13, 0.0 }
 0x15c   :  { %129 = vadd.xlane.f32.xlu0 %v128_v14 }
 0x172   :  { %258 = vrot.lane.b32.xlu0 %v116_v7, %s338_s22 }
 0x1e5   :  { %v130_v23 = vpop.xlane.xlu0 %129 }
 0x1e6   :  { %v131_v24 = vmul.f32 0.015625, %v130_v23 }
 0x1e8   :  { %v132_v25 = vadd.f32 1e-05, %v131_v24 }
 0x1e9   :  { %v259_v59 = vpop.permute.xlu0 %258 }
 0x1ea   :  { %332 = vrsqrt.f32 %v132_v25 }
 0x1f7   :  { %v333_v32 = vpop.eup %332 }
 0x1f8   :  { %v134_v33 = vmul.f32 %v333_v32, %v126_v12 }
 0x1fa   :  { %v139_v35 = vmul.f32 %v138_v31, %v134_v33 }
 0x1fc   :  { %v144_v36 = vadd.f32 %v143_v34, %v139_v35 }
 0x1fe   :  { %v145_v37 = vmax.f32 %v144_v36, 0.0 }
 0x200   :  { %327 = vmatmul.mubr.msk.f32.vlgmr.msra.gmra.mxu1 %vm120_vm3, %v145_v37 }
 0x2c0   :  { %v228_v40 = vpop.f32.mrf.mxu1 }
 0x2c1   :  { %v229_v41 = vadd.f32 %v228_v40, %v158_v39 }
 0x2c2   :  { %v328_v42 = vpop.f32.mrf.mxu1 }
 0x2c3   :  { %v233_v43 = vsel %vm232_vm4, %v229_v41, 0.0 }
 0x2c4   :  { %234 = vadd.xlane.f32.xlu1 %v233_v43 }
 0x34d   :  { %v235_v44 = vpop.xlane.xlu1 %234 }
 0x34e   :  { %v237_v45 = vmul.f32 0.03125, %v235_v44 }
 0x350   :  { %v238_v46 = vsub.f32 %v229_v41, %v237_v45 }
 0x352   :  { %v239_v47 = vmul.f32 %v238_v46, %v238_v46 }
 0x354   :  { %v240_v48 = vsel %vm232_vm4, %v239_v47, 0.0 }
 0x355   :  { %241 = vadd.xlane.f32.xlu1 %v240_v48 }
 0x3de   :  { %v242_v49 = vpop.xlane.xlu1 %241 }
 0x3df   :  { %v243_v50 = vmul.f32 0.03125, %v242_v49 }
 0x3e1   :  { %v244_v51 = vadd.f32 1e-05, %v243_v50 }
 0x3e3   :  { %334 = vrsqrt.f32 %v244_v51 }
 0x3f0   :  { %v335_v54 = vpop.eup %334 }
 0x3f1   :  { %v246_v56 = vmul.f32 %v335_v54, %v238_v46 }
 0x3f3   :  { %v251_v57 = vmul.f32 %v250_v53, %v246_v56 }
 0x3f5   :  { %v256_v58 = vadd.f32 %v255_v55, %v251_v57 }
 0x3f7   :  { %v261_v60 = vadd.f32 %v259_v59, %v256_v58 }
 0x3f9   :  { %v262_v62 = vmax.f32 %v261_v60, 0.0 }
 0x3fb   :  { %v270_v63 = vmul.f32 %v287_v61, %v262_v62 }
 0x3fd   :  { %v271_v0 = vsel %vm232_vm4, %v270_v63, 0.0 }
 0x3fe   :  { %272 = vadd.xlane.f32.xlu1 %v271_v0 }
 0x487   :  { %v273_v2 = vpop.xlane.xlu1 %272 }
 0x488   :  { %v276_v3 = vadd.f32 %v275_v1, %v273_v2 }
 0x48a   :  { %278 = vst.msk [vmem:[%s452_s8] sm:$0xff] %vm277_vm5, %v276_v3 }

</bundles_post_ra>
